<compile_context>
chip_gen: v6e
topology: v6e:2x2x1
jax: 0.10.0
libtpu: 0.0.40
codegen_flags: <defaults>
</compile_context>

<pallas_src>
import functools
import math

import jax
import jax.numpy as jnp
from jax.experimental import pallas as pl
from jax.experimental.pallas import tpu as pltpu

N_STATE = 32
N_HEAD = 4
HEAD_DIM = N_STATE // N_HEAD
N_MLP = 4 * N_STATE
LN_EPS = 1e-5


def _layer_norm(x, gamma, beta):
    xf = x.astype(jnp.float32)
    mu = jnp.mean(xf, axis=-1, keepdims=True)
    var = jnp.mean(jnp.square(xf - mu), axis=-1, keepdims=True)
    return (xf - mu) * jax.lax.rsqrt(var + LN_EPS) * gamma + beta


def residual_block_kernel(
    x_ref, mask_ref,
    ln1_g_ref, ln1_b_ref,
    wqkv_ref, bqkv_ref, wo_ref, bo_ref,
    ln2_g_ref, ln2_b_ref,
    w1_ref, b1_ref, w2_ref, b2_ref,
    out_ref,
    *, nb, nt,
):
    C, H, D = N_STATE, N_HEAD, HEAD_DIM
    x = x_ref[...]            # (nb*nt, C) float32 -- whole batch, flattened
    mask = mask_ref[...]      # (nt, nt)

    # ---- self-attention branch: x + attn(attn_ln(x)) ----
    xn = _layer_norm(x, ln1_g_ref[...], ln1_b_ref[...])
    # fused QKV projection; q columns already carry the D**-0.5 scale.
    qkv = jnp.dot(xn, wqkv_ref[...], preferred_element_type=jnp.float32) + bqkv_ref[...]
    qkv3 = qkv.reshape(nb, nt, 3 * C)          # leading-dim split only (cheap)

    wo = wo_ref[...]                           # (C, C)
    attn = jnp.zeros((nb * nt, C), jnp.float32)
    for h in range(H):                         # static unroll over 4 heads
        lo = h * D
        qh = qkv3[:, :, lo:lo + D]             # (nb, nt, D)
        kh = qkv3[:, :, C + lo:C + lo + D]     # (nb, nt, D)
        vh = qkv3[:, :, 2 * C + lo:2 * C + lo + D]
        s = jnp.einsum('btd,bsd->bts', qh, kh,
                       preferred_element_type=jnp.float32) + mask
        w = jax.nn.softmax(s, axis=-1)         # softmax in float32
        oh = jnp.einsum('bts,bsd->btd', w, vh,
                        preferred_element_type=jnp.float32)
        # accumulate the output projection per head -> no concatenate needed
        attn = attn + jnp.dot(oh.reshape(nb * nt, D), wo[lo:lo + D, :],
                              preferred_element_type=jnp.float32)
    x = x + attn + bo_ref[...]

    # ---- MLP branch: x + mlp(mlp_ln(x)) ----
    xn2 = _layer_norm(x, ln2_g_ref[...], ln2_b_ref[...])
    h1 = jnp.dot(xn2, w1_ref[...], preferred_element_type=jnp.float32) + b1_ref[...]
    g = 0.5 * h1 * (1.0 + jax.lax.erf(h1 / math.sqrt(2.0)))   # exact GELU (nn.GELU default)
    out_ref[...] = x + jnp.dot(g, w2_ref[...], preferred_element_type=jnp.float32) + b2_ref[...]


def residual_attention_block(x, mask, p):
    B, T, C = x.shape
    assert C == N_STATE

    # Fold the dual D**-0.25 scaling into the query weights: (q*s)(k*s) == (q*s^2)k.
    scale = HEAD_DIM ** (-0.5)
    wqkv = jnp.concatenate([p["wq"] * scale, p["wk"], p["wv"]], axis=1)       # (C, 3C)
    bqkv = jnp.concatenate(
        [p["bq"] * scale, jnp.zeros((1, C), jnp.float32), p["bv"]], axis=1)   # (1, 3C)

    x_flat = x.reshape(B * T, C)   # free row-major reshape at the XLA level

    full = lambda shape: pl.BlockSpec(shape, lambda i: tuple(0 for _ in shape))

    in_specs = [
        full((B * T, C)),                     # x (flattened batch)
        full((T, T)),                         # mask
        full((1, C)), full((1, C)),           # attn_ln gamma, beta
        full((C, 3 * C)), full((1, 3 * C)),   # fused Wqkv, bqkv
        full((C, C)), full((1, C)),           # Wo, bo
        full((1, C)), full((1, C)),           # mlp_ln gamma, beta
        full((C, N_MLP)), full((1, N_MLP)),   # W1, b1
        full((N_MLP, C)), full((1, C)),       # W2, b2
    ]

    kernel = functools.partial(residual_block_kernel, nb=B, nt=T)

    out = pl.pallas_call(
        kernel,
        out_shape=jax.ShapeDtypeStruct((B * T, C), jnp.float32),
        grid=(1,),                            # whole batch in one grid step
        in_specs=in_specs,
        out_specs=full((B * T, C)),
        compiler_params=pltpu.CompilerParams(dimension_semantics=("arbitrary",)),
    )(
        x_flat, mask,
        p["ln1_g"], p["ln1_b"],
        wqkv, bqkv, p["wo"], p["bo"],
        p["ln2_g"], p["ln2_b"],
        p["w1"], p["b1"], p["w2"], p["b2"],
    )
    return out.reshape(B, T, C)


def ref_forward(x, mask, p):
    """Pure-JAX reference mirroring the PyTorch forward (default config)."""
    def ln(v, g, b):
        mu = v.mean(-1, keepdims=True)
        var = ((v - mu) ** 2).mean(-1, keepdims=True)
        return (v - mu) * jax.lax.rsqrt(var + LN_EPS) * g + b

    B, T, C = x.shape
    H, D = N_HEAD, HEAD_DIM
    scale = D ** (-0.25)

    xn = ln(x, p["ln1_g"][0], p["ln1_b"][0])
    q = xn @ p["wq"] + p["bq"][0]
    k = xn @ p["wk"]
    v = xn @ p["wv"] + p["bv"][0]
    qh = q.reshape(B, T, H, D).transpose(0, 2, 1, 3) * scale
    kh = k.reshape(B, T, H, D).transpose(0, 2, 3, 1) * scale
    vh = v.reshape(B, T, H, D).transpose(0, 2, 1, 3)
    qk = qh @ kh + mask
    w = jax.nn.softmax(qk, axis=-1)
    wv = (w @ vh).transpose(0, 2, 1, 3).reshape(B, T, C)
    x = x + wv @ p["wo"] + p["bo"][0]

    xn2 = ln(x, p["ln2_g"][0], p["ln2_b"][0])
    h1 = xn2 @ p["w1"] + p["b1"][0]
    g = 0.5 * h1 * (1.0 + jax.lax.erf(h1 / math.sqrt(2.0)))
    return x + g @ p["w2"] + p["b2"][0]


def init_params(key):
    ks = jax.random.split(key, 12)
    n = lambda k, shape: (0.02 * jax.random.normal(k, shape)).astype(jnp.float32)
    C, M = N_STATE, N_MLP
    return {
        "ln1_g": jnp.ones((1, C), jnp.float32),
        "ln1_b": jnp.zeros((1, C), jnp.float32),
        "wq": n(ks[0], (C, C)), "bq": n(ks[1], (1, C)),
        "wk": n(ks[2], (C, C)),
        "wv": n(ks[3], (C, C)), "bv": n(ks[4], (1, C)),
        "wo": n(ks[5], (C, C)), "bo": n(ks[6], (1, C)),
        "ln2_g": jnp.ones((1, C), jnp.float32),
        "ln2_b": jnp.zeros((1, C), jnp.float32),
        "w1": n(ks[7], (C, M)), "b1": n(ks[8], (1, M)),
        "w2": n(ks[9], (M, C)), "b2": n(ks[10], (1, C)),
    }


if __name__ == "__main__":
    B, T, C = 2, 8, N_STATE
    key = jax.random.PRNGKey(0)
    kx, kp = jax.random.split(key)
    x = jax.random.normal(kx, (B, T, C), dtype=jnp.float32)
    # Whisper-style causal mask (upper-triangular -inf).
    mask = jnp.triu(jnp.full((T, T), -jnp.inf, dtype=jnp.float32), k=1)
    params = init_params(kp)

    out = residual_attention_block(x, mask, params)
    out = jax.block_until_ready(out)

    ref = ref_forward(x, mask, params)
    assert out.shape == (B, T, C)
    assert jnp.allclose(out, ref, atol=1e-4, rtol=1e-4), "mismatch vs JAX reference"

    # TODO(synk): cross_attention / gated-x-attn / kv_cache branches are inactive
    # in the default constructor config and are not implemented here.
    print("KERNEL_OK")
</pallas_src>

<mosaic_0001>
module attributes {stable_mosaic.version = 11 : i64} {
  func.func @residual_block_kernel(%arg0: i32, %arg1: memref<16x32xf32, #tpu.memory_space<vmem>>, %arg2: memref<8x8xf32, #tpu.memory_space<vmem>>, %arg3: memref<1x32xf32, #tpu.memory_space<vmem>>, %arg4: memref<1x32xf32, #tpu.memory_space<vmem>>, %arg5: memref<32x96xf32, #tpu.memory_space<vmem>>, %arg6: memref<1x96xf32, #tpu.memory_space<vmem>>, %arg7: memref<32x32xf32, #tpu.memory_space<vmem>>, %arg8: memref<1x32xf32, #tpu.memory_space<vmem>>, %arg9: memref<1x32xf32, #tpu.memory_space<vmem>>, %arg10: memref<1x32xf32, #tpu.memory_space<vmem>>, %arg11: memref<32x128xf32, #tpu.memory_space<vmem>>, %arg12: memref<1x128xf32, #tpu.memory_space<vmem>>, %arg13: memref<128x32xf32, #tpu.memory_space<vmem>>, %arg14: memref<1x32xf32, #tpu.memory_space<vmem>>, %arg15: memref<16x32xf32, #tpu.memory_space<vmem>>) attributes {dimension_semantics = [#tpu.dimension_semantics<arbitrary>], iteration_bounds = array<i64: 1>, scalar_prefetch = 0 : i64, scratch_operands = 0 : i64, tpu.core_type = #tpu.core_type<tc>, window_params = [{pipeline_mode = #tpu.pipeline_mode<synchronous>, transform_indices = @transform_0, window_bounds = array<i64: 16, 32>}, {pipeline_mode = #tpu.pipeline_mode<synchronous>, transform_indices = @transform_1, window_bounds = array<i64: 8, 8>}, {pipeline_mode = #tpu.pipeline_mode<synchronous>, transform_indices = @transform_2, window_bounds = array<i64: 1, 32>}, {pipeline_mode = #tpu.pipeline_mode<synchronous>, transform_indices = @transform_3, window_bounds = array<i64: 1, 32>}, {pipeline_mode = #tpu.pipeline_mode<synchronous>, transform_indices = @transform_4, window_bounds = array<i64: 32, 96>}, {pipeline_mode = #tpu.pipeline_mode<synchronous>, transform_indices = @transform_5, window_bounds = array<i64: 1, 96>}, {pipeline_mode = #tpu.pipeline_mode<synchronous>, transform_indices = @transform_6, window_bounds = array<i64: 32, 32>}, {pipeline_mode = #tpu.pipeline_mode<synchronous>, transform_indices = @transform_7, window_bounds = array<i64: 1, 32>}, {pipeline_mode = #tpu.pipeline_mode<synchronous>, transform_indices = @transform_8, window_bounds = array<i64: 1, 32>}, {pipeline_mode = #tpu.pipeline_mode<synchronous>, transform_indices = @transform_9, window_bounds = array<i64: 1, 32>}, {pipeline_mode = #tpu.pipeline_mode<synchronous>, transform_indices = @transform_10, window_bounds = array<i64: 32, 128>}, {pipeline_mode = #tpu.pipeline_mode<synchronous>, transform_indices = @transform_11, window_bounds = array<i64: 1, 128>}, {pipeline_mode = #tpu.pipeline_mode<synchronous>, transform_indices = @transform_12, window_bounds = array<i64: 128, 32>}, {pipeline_mode = #tpu.pipeline_mode<synchronous>, transform_indices = @transform_13, window_bounds = array<i64: 1, 32>}, {pipeline_mode = #tpu.pipeline_mode<synchronous>, transform_indices = @transform_14, window_bounds = array<i64: 16, 32>}]} {
    %c0 = arith.constant 0 : index
    %c0_0 = arith.constant 0 : index
    %0 = vector.load %arg1[%c0, %c0_0] : memref<16x32xf32, #tpu.memory_space<vmem>>, vector<16x32xf32>
    %c0_1 = arith.constant 0 : index
    %c0_2 = arith.constant 0 : index
    %1 = vector.load %arg2[%c0_1, %c0_2] : memref<8x8xf32, #tpu.memory_space<vmem>>, vector<8x8xf32>
    %c0_3 = arith.constant 0 : index
    %c0_4 = arith.constant 0 : index
    %2 = vector.load %arg3[%c0_3, %c0_4] : memref<1x32xf32, #tpu.memory_space<vmem>>, vector<1x32xf32>
    %c0_5 = arith.constant 0 : index
    %c0_6 = arith.constant 0 : index
    %3 = vector.load %arg4[%c0_5, %c0_6] : memref<1x32xf32, #tpu.memory_space<vmem>>, vector<1x32xf32>
    %cst = arith.constant dense<0.000000e+00> : vector<16xf32>
    %4 = vector.multi_reduction <add>, %0, %cst [1] : vector<16x32xf32> to vector<16xf32>
    %5 = vector.shape_cast %4 : vector<16xf32> to vector<16x1xf32>
    %cst_7 = arith.constant 3.200000e+01 : f32
    %6 = vector.broadcast %cst_7 : f32 to vector<16x1xf32>
    %7 = arith.divf %5, %6 : vector<16x1xf32>
    %8 = vector.broadcast %7 : vector<16x1xf32> to vector<16x32xf32>
    %9 = arith.subf %0, %8 : vector<16x32xf32>
    %10 = arith.mulf %9, %9 : vector<16x32xf32>
    %cst_8 = arith.constant dense<0.000000e+00> : vector<16xf32>
    %11 = vector.multi_reduction <add>, %10, %cst_8 [1] : vector<16x32xf32> to vector<16xf32>
    %12 = vector.shape_cast %11 : vector<16xf32> to vector<16x1xf32>
    %cst_9 = arith.constant 3.200000e+01 : f32
    %13 = vector.broadcast %cst_9 : f32 to vector<16x1xf32>
    %14 = arith.divf %12, %13 : vector<16x1xf32>
    %15 = vector.broadcast %7 : vector<16x1xf32> to vector<16x32xf32>
    %16 = arith.subf %0, %15 : vector<16x32xf32>
    %cst_10 = arith.constant 9.99999974E-6 : f32
    %17 = vector.broadcast %cst_10 : f32 to vector<16x1xf32>
    %18 = arith.addf %14, %17 : vector<16x1xf32>
    %19 = math.rsqrt %18 : vector<16x1xf32>
    %20 = vector.broadcast %19 : vector<16x1xf32> to vector<16x32xf32>
    %21 = arith.mulf %16, %20 : vector<16x32xf32>
    %22 = vector.broadcast %2 : vector<1x32xf32> to vector<16x32xf32>
    %23 = arith.mulf %21, %22 : vector<16x32xf32>
    %24 = vector.broadcast %3 : vector<1x32xf32> to vector<16x32xf32>
    %25 = arith.addf %23, %24 : vector<16x32xf32>
    %c0_11 = arith.constant 0 : index
    %c0_12 = arith.constant 0 : index
    %26 = vector.load %arg5[%c0_11, %c0_12] : memref<32x96xf32, #tpu.memory_space<vmem>>, vector<32x96xf32>
    %cst_13 = arith.constant dense<0.000000e+00> : vector<16x96xf32>
    %27 = tpu.matmul %25, %26, %cst_13 {dimension_numbers = #tpu.dot_dimension_numbers<[1], [0], [0], [1], [0, 0, 1, 1], [], []>} : vector<16x32xf32>, vector<32x96xf32>, vector<16x96xf32> -> vector<16x96xf32>
    %c0_14 = arith.constant 0 : index
    %c0_15 = arith.constant 0 : index
    %28 = vector.load %arg6[%c0_14, %c0_15] : memref<1x96xf32, #tpu.memory_space<vmem>>, vector<1x96xf32>
    %29 = vector.broadcast %28 : vector<1x96xf32> to vector<16x96xf32>
    %30 = arith.addf %27, %29 : vector<16x96xf32>
    %31 = vector.shape_cast %30 : vector<16x96xf32> to vector<2x8x96xf32>
    %c0_16 = arith.constant 0 : index
    %c0_17 = arith.constant 0 : index
    %32 = vector.load %arg7[%c0_16, %c0_17] : memref<32x32xf32, #tpu.memory_space<vmem>>, vector<32x32xf32>
    %cst_18 = arith.constant 0.000000e+00 : f32
    %33 = vector.broadcast %cst_18 : f32 to vector<16x32xf32>
    %34 = vector.extract_strided_slice %31 {offsets = [0, 0, 0], sizes = [2, 8, 8], strides = [1, 1, 1]} : vector<2x8x96xf32> to vector<2x8x8xf32>
    %35 = vector.extract_strided_slice %31 {offsets = [0, 0, 32], sizes = [2, 8, 8], strides = [1, 1, 1]} : vector<2x8x96xf32> to vector<2x8x8xf32>
    %36 = vector.extract_strided_slice %31 {offsets = [0, 0, 64], sizes = [2, 8, 8], strides = [1, 1, 1]} : vector<2x8x96xf32> to vector<2x8x8xf32>
    "tpu.trace_start"() <{level = 10 : i32, message = "btd,bsd->bts"}> : () -> ()
    %cst_19 = arith.constant dense<0.000000e+00> : vector<2x8x8xf32>
    %37 = tpu.matmul %34, %35, %cst_19 {dimension_numbers = #tpu.dot_dimension_numbers<[2], [2], [1], [1], [0, 0, 0, 1, 1, 1], [0], [0]>} : vector<2x8x8xf32>, vector<2x8x8xf32>, vector<2x8x8xf32> -> vector<2x8x8xf32>
    "tpu.trace_stop"() : () -> ()
    %38 = vector.shape_cast %1 : vector<8x8xf32> to vector<1x8x8xf32>
    %39 = vector.broadcast %38 : vector<1x8x8xf32> to vector<2x8x8xf32>
    %40 = arith.addf %37, %39 : vector<2x8x8xf32>
    %cst_20 = arith.constant dense<0xFF800000> : vector<2x8xf32>
    %41 = vector.multi_reduction <maximumf>, %40, %cst_20 [2] : vector<2x8x8xf32> to vector<2x8xf32>
    %cst_21 = arith.constant 0xFF800000 : f32
    %42 = vector.broadcast %cst_21 : f32 to vector<2x8xf32>
    %43 = arith.maximumf %42, %41 : vector<2x8xf32>
    %44 = vector.shape_cast %43 : vector<2x8xf32> to vector<2x8x1xf32>
    %45 = vector.broadcast %44 : vector<2x8x1xf32> to vector<2x8x8xf32>
    %46 = arith.subf %40, %45 : vector<2x8x8xf32>
    %47 = math.exp %46 : vector<2x8x8xf32>
    %cst_22 = arith.constant dense<0.000000e+00> : vector<2x8xf32>
    %48 = vector.multi_reduction <add>, %47, %cst_22 [2] : vector<2x8x8xf32> to vector<2x8xf32>
    %49 = vector.shape_cast %48 : vector<2x8xf32> to vector<2x8x1xf32>
    %50 = vector.broadcast %49 : vector<2x8x1xf32> to vector<2x8x8xf32>
    %51 = arith.divf %47, %50 : vector<2x8x8xf32>
    "tpu.trace_start"() <{level = 10 : i32, message = "bts,bsd->btd"}> : () -> ()
    %cst_23 = arith.constant dense<0.000000e+00> : vector<2x8x8xf32>
    %52 = tpu.matmul %51, %36, %cst_23 {dimension_numbers = #tpu.dot_dimension_numbers<[2], [1], [1], [2], [0, 0, 0, 1, 1, 2], [0], [0]>} : vector<2x8x8xf32>, vector<2x8x8xf32>, vector<2x8x8xf32> -> vector<2x8x8xf32>
    "tpu.trace_stop"() : () -> ()
    %53 = vector.shape_cast %52 : vector<2x8x8xf32> to vector<16x8xf32>
    %54 = vector.extract_strided_slice %32 {offsets = [0, 0], sizes = [8, 32], strides = [1, 1]} : vector<32x32xf32> to vector<8x32xf32>
    %cst_24 = arith.constant dense<0.000000e+00> : vector<16x32xf32>
    %55 = tpu.matmul %53, %54, %cst_24 {dimension_numbers = #tpu.dot_dimension_numbers<[1], [0], [0], [1], [0, 0, 1, 1], [], []>} : vector<16x8xf32>, vector<8x32xf32>, vector<16x32xf32> -> vector<16x32xf32>
    %56 = arith.addf %33, %55 : vector<16x32xf32>
    %57 = vector.extract_strided_slice %31 {offsets = [0, 0, 8], sizes = [2, 8, 8], strides = [1, 1, 1]} : vector<2x8x96xf32> to vector<2x8x8xf32>
    %58 = vector.extract_strided_slice %31 {offsets = [0, 0, 40], sizes = [2, 8, 8], strides = [1, 1, 1]} : vector<2x8x96xf32> to vector<2x8x8xf32>
    %59 = vector.extract_strided_slice %31 {offsets = [0, 0, 72], sizes = [2, 8, 8], strides = [1, 1, 1]} : vector<2x8x96xf32> to vector<2x8x8xf32>
    "tpu.trace_start"() <{level = 10 : i32, message = "btd,bsd->bts"}> : () -> ()
    %cst_25 = arith.constant dense<0.000000e+00> : vector<2x8x8xf32>
    %60 = tpu.matmul %57, %58, %cst_25 {dimension_numbers = #tpu.dot_dimension_numbers<[2], [2], [1], [1], [0, 0, 0, 1, 1, 1], [0], [0]>} : vector<2x8x8xf32>, vector<2x8x8xf32>, vector<2x8x8xf32> -> vector<2x8x8xf32>
    "tpu.trace_stop"() : () -> ()
    %61 = vector.shape_cast %1 : vector<8x8xf32> to vector<1x8x8xf32>
    %62 = vector.broadcast %61 : vector<1x8x8xf32> to vector<2x8x8xf32>
    %63 = arith.addf %60, %62 : vector<2x8x8xf32>
    %cst_26 = arith.constant dense<0xFF800000> : vector<2x8xf32>
    %64 = vector.multi_reduction <maximumf>, %63, %cst_26 [2] : vector<2x8x8xf32> to vector<2x8xf32>
    %cst_27 = arith.constant 0xFF800000 : f32
    %65 = vector.broadcast %cst_27 : f32 to vector<2x8xf32>
    %66 = arith.maximumf %65, %64 : vector<2x8xf32>
    %67 = vector.shape_cast %66 : vector<2x8xf32> to vector<2x8x1xf32>
    %68 = vector.broadcast %67 : vector<2x8x1xf32> to vector<2x8x8xf32>
    %69 = arith.subf %63, %68 : vector<2x8x8xf32>
    %70 = math.exp %69 : vector<2x8x8xf32>
    %cst_28 = arith.constant dense<0.000000e+00> : vector<2x8xf32>
    %71 = vector.multi_reduction <add>, %70, %cst_28 [2] : vector<2x8x8xf32> to vector<2x8xf32>
    %72 = vector.shape_cast %71 : vector<2x8xf32> to vector<2x8x1xf32>
    %73 = vector.broadcast %72 : vector<2x8x1xf32> to vector<2x8x8xf32>
    %74 = arith.divf %70, %73 : vector<2x8x8xf32>
    "tpu.trace_start"() <{level = 10 : i32, message = "bts,bsd->btd"}> : () -> ()
    %cst_29 = arith.constant dense<0.000000e+00> : vector<2x8x8xf32>
    %75 = tpu.matmul %74, %59, %cst_29 {dimension_numbers = #tpu.dot_dimension_numbers<[2], [1], [1], [2], [0, 0, 0, 1, 1, 2], [0], [0]>} : vector<2x8x8xf32>, vector<2x8x8xf32>, vector<2x8x8xf32> -> vector<2x8x8xf32>
    "tpu.trace_stop"() : () -> ()
    %76 = vector.shape_cast %75 : vector<2x8x8xf32> to vector<16x8xf32>
    %77 = vector.extract_strided_slice %32 {offsets = [8, 0], sizes = [8, 32], strides = [1, 1]} : vector<32x32xf32> to vector<8x32xf32>
    %cst_30 = arith.constant dense<0.000000e+00> : vector<16x32xf32>
    %78 = tpu.matmul %76, %77, %cst_30 {dimension_numbers = #tpu.dot_dimension_numbers<[1], [0], [0], [1], [0, 0, 1, 1], [], []>} : vector<16x8xf32>, vector<8x32xf32>, vector<16x32xf32> -> vector<16x32xf32>
    %79 = arith.addf %56, %78 : vector<16x32xf32>
    %80 = vector.extract_strided_slice %31 {offsets = [0, 0, 16], sizes = [2, 8, 8], strides = [1, 1, 1]} : vector<2x8x96xf32> to vector<2x8x8xf32>
    %81 = vector.extract_strided_slice %31 {offsets = [0, 0, 48], sizes = [2, 8, 8], strides = [1, 1, 1]} : vector<2x8x96xf32> to vector<2x8x8xf32>
    %82 = vector.extract_strided_slice %31 {offsets = [0, 0, 80], sizes = [2, 8, 8], strides = [1, 1, 1]} : vector<2x8x96xf32> to vector<2x8x8xf32>
    "tpu.trace_start"() <{level = 10 : i32, message = "btd,bsd->bts"}> : () -> ()
    %cst_31 = arith.constant dense<0.000000e+00> : vector<2x8x8xf32>
    %83 = tpu.matmul %80, %81, %cst_31 {dimension_numbers = #tpu.dot_dimension_numbers<[2], [2], [1], [1], [0, 0, 0, 1, 1, 1], [0], [0]>} : vector<2x8x8xf32>, vector<2x8x8xf32>, vector<2x8x8xf32> -> vector<2x8x8xf32>
    "tpu.trace_stop"() : () -> ()
    %84 = vector.shape_cast %1 : vector<8x8xf32> to vector<1x8x8xf32>
    %85 = vector.broadcast %84 : vector<1x8x8xf32> to vector<2x8x8xf32>
    %86 = arith.addf %83, %85 : vector<2x8x8xf32>
    %cst_32 = arith.constant dense<0xFF800000> : vector<2x8xf32>
    %87 = vector.multi_reduction <maximumf>, %86, %cst_32 [2] : vector<2x8x8xf32> to vector<2x8xf32>
    %cst_33 = arith.constant 0xFF800000 : f32
    %88 = vector.broadcast %cst_33 : f32 to vector<2x8xf32>
    %89 = arith.maximumf %88, %87 : vector<2x8xf32>
    %90 = vector.shape_cast %89 : vector<2x8xf32> to vector<2x8x1xf32>
    %91 = vector.broadcast %90 : vector<2x8x1xf32> to vector<2x8x8xf32>
    %92 = arith.subf %86, %91 : vector<2x8x8xf32>
    %93 = math.exp %92 : vector<2x8x8xf32>
    %cst_34 = arith.constant dense<0.000000e+00> : vector<2x8xf32>
    %94 = vector.multi_reduction <add>, %93, %cst_34 [2] : vector<2x8x8xf32> to vector<2x8xf32>
    %95 = vector.shape_cast %94 : vector<2x8xf32> to vector<2x8x1xf32>
    %96 = vector.broadcast %95 : vector<2x8x1xf32> to vector<2x8x8xf32>
    %97 = arith.divf %93, %96 : vector<2x8x8xf32>
    "tpu.trace_start"() <{level = 10 : i32, message = "bts,bsd->btd"}> : () -> ()
    %cst_35 = arith.constant dense<0.000000e+00> : vector<2x8x8xf32>
    %98 = tpu.matmul %97, %82, %cst_35 {dimension_numbers = #tpu.dot_dimension_numbers<[2], [1], [1], [2], [0, 0, 0, 1, 1, 2], [0], [0]>} : vector<2x8x8xf32>, vector<2x8x8xf32>, vector<2x8x8xf32> -> vector<2x8x8xf32>
    "tpu.trace_stop"() : () -> ()
    %99 = vector.shape_cast %98 : vector<2x8x8xf32> to vector<16x8xf32>
    %100 = vector.extract_strided_slice %32 {offsets = [16, 0], sizes = [8, 32], strides = [1, 1]} : vector<32x32xf32> to vector<8x32xf32>
    %cst_36 = arith.constant dense<0.000000e+00> : vector<16x32xf32>
    %101 = tpu.matmul %99, %100, %cst_36 {dimension_numbers = #tpu.dot_dimension_numbers<[1], [0], [0], [1], [0, 0, 1, 1], [], []>} : vector<16x8xf32>, vector<8x32xf32>, vector<16x32xf32> -> vector<16x32xf32>
    %102 = arith.addf %79, %101 : vector<16x32xf32>
    %103 = vector.extract_strided_slice %31 {offsets = [0, 0, 24], sizes = [2, 8, 8], strides = [1, 1, 1]} : vector<2x8x96xf32> to vector<2x8x8xf32>
    %104 = vector.extract_strided_slice %31 {offsets = [0, 0, 56], sizes = [2, 8, 8], strides = [1, 1, 1]} : vector<2x8x96xf32> to vector<2x8x8xf32>
    %105 = vector.extract_strided_slice %31 {offsets = [0, 0, 88], sizes = [2, 8, 8], strides = [1, 1, 1]} : vector<2x8x96xf32> to vector<2x8x8xf32>
    "tpu.trace_start"() <{level = 10 : i32, message = "btd,bsd->bts"}> : () -> ()
    %cst_37 = arith.constant dense<0.000000e+00> : vector<2x8x8xf32>
    %106 = tpu.matmul %103, %104, %cst_37 {dimension_numbers = #tpu.dot_dimension_numbers<[2], [2], [1], [1], [0, 0, 0, 1, 1, 1], [0], [0]>} : vector<2x8x8xf32>, vector<2x8x8xf32>, vector<2x8x8xf32> -> vector<2x8x8xf32>
    "tpu.trace_stop"() : () -> ()
    %107 = vector.shape_cast %1 : vector<8x8xf32> to vector<1x8x8xf32>
    %108 = vector.broadcast %107 : vector<1x8x8xf32> to vector<2x8x8xf32>
    %109 = arith.addf %106, %108 : vector<2x8x8xf32>
    %cst_38 = arith.constant dense<0xFF800000> : vector<2x8xf32>
    %110 = vector.multi_reduction <maximumf>, %109, %cst_38 [2] : vector<2x8x8xf32> to vector<2x8xf32>
    %cst_39 = arith.constant 0xFF800000 : f32
    %111 = vector.broadcast %cst_39 : f32 to vector<2x8xf32>
    %112 = arith.maximumf %111, %110 : vector<2x8xf32>
    %113 = vector.shape_cast %112 : vector<2x8xf32> to vector<2x8x1xf32>
    %114 = vector.broadcast %113 : vector<2x8x1xf32> to vector<2x8x8xf32>
    %115 = arith.subf %109, %114 : vector<2x8x8xf32>
    %116 = math.exp %115 : vector<2x8x8xf32>
    %cst_40 = arith.constant dense<0.000000e+00> : vector<2x8xf32>
    %117 = vector.multi_reduction <add>, %116, %cst_40 [2] : vector<2x8x8xf32> to vector<2x8xf32>
    %118 = vector.shape_cast %117 : vector<2x8xf32> to vector<2x8x1xf32>
    %119 = vector.broadcast %118 : vector<2x8x1xf32> to vector<2x8x8xf32>
    %120 = arith.divf %116, %119 : vector<2x8x8xf32>
    "tpu.trace_start"() <{level = 10 : i32, message = "bts,bsd->btd"}> : () -> ()
    %cst_41 = arith.constant dense<0.000000e+00> : vector<2x8x8xf32>
    %121 = tpu.matmul %120, %105, %cst_41 {dimension_numbers = #tpu.dot_dimension_numbers<[2], [1], [1], [2], [0, 0, 0, 1, 1, 2], [0], [0]>} : vector<2x8x8xf32>, vector<2x8x8xf32>, vector<2x8x8xf32> -> vector<2x8x8xf32>
    "tpu.trace_stop"() : () -> ()
    %122 = vector.shape_cast %121 : vector<2x8x8xf32> to vector<16x8xf32>
    %123 = vector.extract_strided_slice %32 {offsets = [24, 0], sizes = [8, 32], strides = [1, 1]} : vector<32x32xf32> to vector<8x32xf32>
    %cst_42 = arith.constant dense<0.000000e+00> : vector<16x32xf32>
    %124 = tpu.matmul %122, %123, %cst_42 {dimension_numbers = #tpu.dot_dimension_numbers<[1], [0], [0], [1], [0, 0, 1, 1], [], []>} : vector<16x8xf32>, vector<8x32xf32>, vector<16x32xf32> -> vector<16x32xf32>
    %125 = arith.addf %102, %124 : vector<16x32xf32>
    %126 = arith.addf %0, %125 : vector<16x32xf32>
    %c0_43 = arith.constant 0 : index
    %c0_44 = arith.constant 0 : index
    %127 = vector.load %arg8[%c0_43, %c0_44] : memref<1x32xf32, #tpu.memory_space<vmem>>, vector<1x32xf32>
    %128 = vector.broadcast %127 : vector<1x32xf32> to vector<16x32xf32>
    %129 = arith.addf %126, %128 : vector<16x32xf32>
    %c0_45 = arith.constant 0 : index
    %c0_46 = arith.constant 0 : index
    %130 = vector.load %arg9[%c0_45, %c0_46] : memref<1x32xf32, #tpu.memory_space<vmem>>, vector<1x32xf32>
    %c0_47 = arith.constant 0 : index
    %c0_48 = arith.constant 0 : index
    %131 = vector.load %arg10[%c0_47, %c0_48] : memref<1x32xf32, #tpu.memory_space<vmem>>, vector<1x32xf32>
    %cst_49 = arith.constant dense<0.000000e+00> : vector<16xf32>
    %132 = vector.multi_reduction <add>, %129, %cst_49 [1] : vector<16x32xf32> to vector<16xf32>
    %133 = vector.shape_cast %132 : vector<16xf32> to vector<16x1xf32>
    %cst_50 = arith.constant 3.200000e+01 : f32
    %134 = vector.broadcast %cst_50 : f32 to vector<16x1xf32>
    %135 = arith.divf %133, %134 : vector<16x1xf32>
    %136 = vector.broadcast %135 : vector<16x1xf32> to vector<16x32xf32>
    %137 = arith.subf %129, %136 : vector<16x32xf32>
    %138 = arith.mulf %137, %137 : vector<16x32xf32>
    %cst_51 = arith.constant dense<0.000000e+00> : vector<16xf32>
    %139 = vector.multi_reduction <add>, %138, %cst_51 [1] : vector<16x32xf32> to vector<16xf32>
    %140 = vector.shape_cast %139 : vector<16xf32> to vector<16x1xf32>
    %cst_52 = arith.constant 3.200000e+01 : f32
    %141 = vector.broadcast %cst_52 : f32 to vector<16x1xf32>
    %142 = arith.divf %140, %141 : vector<16x1xf32>
    %143 = vector.broadcast %135 : vector<16x1xf32> to vector<16x32xf32>
    %144 = arith.subf %129, %143 : vector<16x32xf32>
    %cst_53 = arith.constant 9.99999974E-6 : f32
    %145 = vector.broadcast %cst_53 : f32 to vector<16x1xf32>
    %146 = arith.addf %142, %145 : vector<16x1xf32>
    %147 = math.rsqrt %146 : vector<16x1xf32>
    %148 = vector.broadcast %147 : vector<16x1xf32> to vector<16x32xf32>
    %149 = arith.mulf %144, %148 : vector<16x32xf32>
    %150 = vector.broadcast %130 : vector<1x32xf32> to vector<16x32xf32>
    %151 = arith.mulf %149, %150 : vector<16x32xf32>
    %152 = vector.broadcast %131 : vector<1x32xf32> to vector<16x32xf32>
    %153 = arith.addf %151, %152 : vector<16x32xf32>
    %c0_54 = arith.constant 0 : index
    %c0_55 = arith.constant 0 : index
    %154 = vector.load %arg11[%c0_54, %c0_55] : memref<32x128xf32, #tpu.memory_space<vmem>>, vector<32x128xf32>
    %cst_56 = arith.constant dense<0.000000e+00> : vector<16x128xf32>
    %155 = tpu.matmul %153, %154, %cst_56 {dimension_numbers = #tpu.dot_dimension_numbers<[1], [0], [0], [1], [0, 0, 1, 1], [], []>} : vector<16x32xf32>, vector<32x128xf32>, vector<16x128xf32> -> vector<16x128xf32>
    %c0_57 = arith.constant 0 : index
    %c0_58 = arith.constant 0 : index
    %156 = vector.load %arg12[%c0_57, %c0_58] : memref<1x128xf32, #tpu.memory_space<vmem>>, vector<1x128xf32>
    %157 = vector.broadcast %156 : vector<1x128xf32> to vector<16x128xf32>
    %158 = arith.addf %155, %157 : vector<16x128xf32>
    %cst_59 = arith.constant 5.000000e-01 : f32
    %159 = vector.broadcast %cst_59 : f32 to vector<16x128xf32>
    %160 = arith.mulf %159, %158 : vector<16x128xf32>
    %cst_60 = arith.constant 1.41421354 : f32
    %161 = vector.broadcast %cst_60 : f32 to vector<16x128xf32>
    %162 = arith.divf %158, %161 : vector<16x128xf32>
    %163 = math.erf %162 : vector<16x128xf32>
    %cst_61 = arith.constant 1.000000e+00 : f32
    %164 = vector.broadcast %cst_61 : f32 to vector<16x128xf32>
    %165 = arith.addf %164, %163 : vector<16x128xf32>
    %166 = arith.mulf %160, %165 : vector<16x128xf32>
    %c0_62 = arith.constant 0 : index
    %c0_63 = arith.constant 0 : index
    %167 = vector.load %arg13[%c0_62, %c0_63] : memref<128x32xf32, #tpu.memory_space<vmem>>, vector<128x32xf32>
    %cst_64 = arith.constant dense<0.000000e+00> : vector<16x32xf32>
    %168 = tpu.matmul %166, %167, %cst_64 {dimension_numbers = #tpu.dot_dimension_numbers<[1], [0], [0], [1], [0, 0, 1, 1], [], []>} : vector<16x128xf32>, vector<128x32xf32>, vector<16x32xf32> -> vector<16x32xf32>
    %169 = arith.addf %129, %168 : vector<16x32xf32>
    %c0_65 = arith.constant 0 : index
    %c0_66 = arith.constant 0 : index
    %170 = vector.load %arg14[%c0_65, %c0_66] : memref<1x32xf32, #tpu.memory_space<vmem>>, vector<1x32xf32>
    %171 = vector.broadcast %170 : vector<1x32xf32> to vector<16x32xf32>
    %172 = arith.addf %169, %171 : vector<16x32xf32>
    %c0_67 = arith.constant 0 : index
    %c0_68 = arith.constant 0 : index
    %173 = vector.load %arg15[%c0_67, %c0_68] : memref<16x32xf32, #tpu.memory_space<vmem>>, vector<16x32xf32>
    tpu.vector_store %arg15[%c0_67, %c0_68], %172 {strides = array<i32>} : memref<16x32xf32, #tpu.memory_space<vmem>>, vector<16x32xf32>,
    return
  }
  func.func @transform_0(%arg0: i32) -> (i32, i32) {
    %c0_i32 = arith.constant 0 : i32
    %c0_i32_0 = arith.constant 0 : i32
    %c0_i32_1 = arith.constant 0 : i32
    return %c0_i32, %c0_i32_0 : i32, i32
  }
  func.func @transform_1(%arg0: i32) -> (i32, i32) {
    %c0_i32 = arith.constant 0 : i32
    %c0_i32_0 = arith.constant 0 : i32
    %c0_i32_1 = arith.constant 0 : i32
    return %c0_i32, %c0_i32_0 : i32, i32
  }
  func.func @transform_2(%arg0: i32) -> (i32, i32) {
    %c0_i32 = arith.constant 0 : i32
    %c0_i32_0 = arith.constant 0 : i32
    %c0_i32_1 = arith.constant 0 : i32
    return %c0_i32, %c0_i32_0 : i32, i32
  }
  func.func @transform_3(%arg0: i32) -> (i32, i32) {
    %c0_i32 = arith.constant 0 : i32
    %c0_i32_0 = arith.constant 0 : i32
    %c0_i32_1 = arith.constant 0 : i32
    return %c0_i32, %c0_i32_0 : i32, i32
  }
  func.func @transform_4(%arg0: i32) -> (i32, i32) {
    %c0_i32 = arith.constant 0 : i32
    %c0_i32_0 = arith.constant 0 : i32
    %c0_i32_1 = arith.constant 0 : i32
    return %c0_i32, %c0_i32_0 : i32, i32
  }
  func.func @transform_5(%arg0: i32) -> (i32, i32) {
    %c0_i32 = arith.constant 0 : i32
    %c0_i32_0 = arith.constant 0 : i32
    %c0_i32_1 = arith.constant 0 : i32
    return %c0_i32, %c0_i32_0 : i32, i32
  }
  func.func @transform_6(%arg0: i32) -> (i32, i32) {
    %c0_i32 = arith.constant 0 : i32
    %c0_i32_0 = arith.constant 0 : i32
    %c0_i32_1 = arith.constant 0 : i32
    return %c0_i32, %c0_i32_0 : i32, i32
  }
  func.func @transform_7(%arg0: i32) -> (i32, i32) {
    %c0_i32 = arith.constant 0 : i32
    %c0_i32_0 = arith.constant 0 : i32
    %c0_i32_1 = arith.constant 0 : i32
    return %c0_i32, %c0_i32_0 : i32, i32
  }
  func.func @transform_8(%arg0: i32) -> (i32, i32) {
    %c0_i32 = arith.constant 0 : i32
    %c0_i32_0 = arith.constant 0 : i32
    %c0_i32_1 = arith.constant 0 : i32
    return %c0_i32, %c0_i32_0 : i32, i32
  }
  func.func @transform_9(%arg0: i32) -> (i32, i32) {
    %c0_i32 = arith.constant 0 : i32
    %c0_i32_0 = arith.constant 0 : i32
    %c0_i32_1 = arith.constant 0 : i32
    return %c0_i32, %c0_i32_0 : i32, i32
  }
  func.func @transform_10(%arg0: i32) -> (i32, i32) {
    %c0_i32 = arith.constant 0 : i32
    %c0_i32_0 = arith.constant 0 : i32
    %c0_i32_1 = arith.constant 0 : i32
    return %c0_i32, %c0_i32_0 : i32, i32
  }
  func.func @transform_11(%arg0: i32) -> (i32, i32) {
    %c0_i32 = arith.constant 0 : i32
    %c0_i32_0 = arith.constant 0 : i32
    %c0_i32_1 = arith.constant 0 : i32
    return %c0_i32, %c0_i32_0 : i32, i32
  }
  func.func @transform_12(%arg0: i32) -> (i32, i32) {
    %c0_i32 = arith.constant 0 : i32
    %c0_i32_0 = arith.constant 0 : i32
    %c0_i32_1 = arith.constant 0 : i32
    return %c0_i32, %c0_i32_0 : i32, i32
  }
  func.func @transform_13(%arg0: i32) -> (i32, i32) {
    %c0_i32 = arith.constant 0 : i32
    %c0_i32_0 = arith.constant 0 : i32
    %c0_i32_1 = arith.constant 0 : i32
    return %c0_i32, %c0_i32_0 : i32, i32
  }
  func.func @transform_14(%arg0: i32) -> (i32, i32) {
    %c0_i32 = arith.constant 0 : i32
    %c0_i32_0 = arith.constant 0 : i32
    %c0_i32_1 = arith.constant 0 : i32
    return %c0_i32, %c0_i32_0 : i32, i32
  }
}

</mosaic_0001>

<bundles_post_ra>
// kernel: tpu_custom_call.1
= control target key start
LH: loop header
LB: loop body
LE: loop exit
PB: predicated region body
PF: predicated region fallthrough
CT: control target
= control target key end

     0   :  { %vm53_vm0 = vcmask 261120   ;;  %s2870_s0 = inlined_call_operand.vmem [shape: f32[16,32], index: 0, kind: input, shape index: {}]   ;;  %s2871_s1 = inlined_call_operand.vmem [shape: f32[8,8], index: 1, kind: input, shape index: {}]   ;;  %s2872_s2 = inlined_call_operand.vmem [shape: f32[1,32], index: 2, kind: input, shape index: {}]   ;;  %s2873_s3 = inlined_call_operand.vmem [shape: f32[1,32], index: 3, kind: input, shape index: {}]   ;;  %s2874_s4 = inlined_call_operand.vmem [shape: f32[32,96], index: 4, kind: input, shape index: {}]   ;;  %s2875_s5 = inlined_call_operand.vmem [shape: f32[1,96], index: 5, kind: input, shape index: {}]   ;;  %s2876_s6 = inlined_call_operand.vmem [shape: f32[32,32], index: 6, kind: input, shape index: {}]   ;;  %s2877_s7 = inlined_call_operand.vmem [shape: f32[1,32], index: 7, kind: input, shape index: {}]   ;;  %s2878_s8 = inlined_call_operand.vmem [shape: f32[1,32], index: 8, kind: input, shape index: {}]   ;;  %s2879_s9 = inlined_call_operand.vmem [shape: f32[1,32], index: 9, kind: input, shape index: {}]   ;;  %s2880_s10 = inlined_call_operand.vmem [shape: f32[32,128], index: 10, kind: input, shape index: {}]   ;;  %s2881_s11 = inlined_call_operand.vmem [shape: f32[1,128], index: 11, kind: input, shape index: {}]   ;;  %s2882_s12 = inlined_call_operand.vmem [shape: f32[128,32], index: 12, kind: input, shape index: {}]   ;;  %s2883_s13 = inlined_call_operand.vmem [shape: f32[1,32], index: 13, kind: input, shape index: {}]   ;;  %s2884_s14 = inlined_call_operand.hbm [shape: f32[16,32], index: 14, kind: output, shape index: {}]  }
   0x1   :  { %v2569_v0 = vld [vmem:[%s2870_s0] sm:$0xff]  ;;  %v2574_v1 = vld [vmem:[%s2870_s0 + $0x8] sm:$0xff] }
   0x2   :  { %19 = vsyncpa [#allocation3], 0  ;;  %v54_v2 = vsel %vm53_vm0, %v2569_v0, 0.0  ;;  %v57_v3 = vsel %vm53_vm0, %v2574_v1, 0.0  ;;  %v100_v14 = vld [vmem:[%s2874_s4 + $0x18] sm:$0xff]  ;;  %v99_v15 = vld [vmem:[%s2874_s4 + $0x10] sm:$0xff] }
   0x3   :  { %55 = vadd.xlane.f32.xlu0 %v54_v2  ;;  %2236 = vmatprep.subr.mxu0 %v100_v14  ;;  %v98_v16 = vld [vmem:[%s2874_s4 + $0x8] sm:$0xff]  ;;  %v97_v17 = vld [vmem:[%s2874_s4] sm:$0xff]  ;;  %v2475_v34 = vmov 0.0   ;;  %vm2476_vm1 = vmmov 0   ;;  %s2477_s4 = smov 96   ;;  %vm196_vm2 = vcmask 64512  }
   0x4   :  { %2237 = vmatpush3.msra.mxu0 %v100_v14  ;;  %v2118_v25 = vld [vmem:[%s2872_s2] ss:$0 sm:$0xff]  ;;  %2272 = vmatprep.subr.mxu1 %v2475_v34  ;;  %s2478_s29 = smov 64   ;;  %s2479_s30 = smov 88  }
   0x5   :  { %2238 = vmatprep.subr.mxu0 %v99_v15  ;;  %v2119_v27 = vld [vmem:[%s2873_s3] ss:$0 sm:$0xff]  ;;  %2274 = vmatprep.mubr.msk.f32.mxu1 %vm2476_vm1, %v2475_v34  ;;  %s2481_s15 = smov 56   ;;  %s2482_s16 = smov 80  }
   0x6   :  { %2239 = vmatpush3.msra.mxu0 %v99_v15  ;;  %v2120_v35 = vld [vmem:[%s2875_s5] ss:$0 sm:$0xff]  ;;  %s2483_s0 = smov 112   ;;  %s2484_s21 = smov 48  }
   0x7   :  { %58 = vadd.xlane.f32.xlu0 %v57_v3  ;;  %2240 = vmatprep.subr.mxu0 %v98_v16  ;;  %v2634_v42 = vld [vmem:[%s2871_s1] sm:$0xff]  ;;  %s2480_s1 = smov 120   ;;  %s2485_s22 = smov 72  }
   0x8   :  { %2241 = vmatpush3.msra.mxu0 %v98_v16  ;;  %s2486_s23 = smov 104   ;;  %s2487_s26 = smov 40  }
   0x9   :  { %2242 = vmatprep.subr.mxu0 %v97_v17  ;;  %s2488_s25 = smov [#allocation2]  }
   0xa   :  { %2243 = vmatpush3.msra.mxu0 %v97_v17 }
   0xb   :  { %2247 = vmatprep.subr.mxu0 %v2475_v34 }
  0x8c   :  { %v56_v4 = vpop.xlane.xlu0 %55 }
  0x8d   :  { %v61_v5 = vmul.f32 0.03125, %v56_v4 }
  0x8f   :  { %v63_v6 = vsub.f32 %v2569_v0, %v61_v5 }
  0x90   :  { %v59_v7 = vpop.xlane.xlu0 %58 }
  0x91   :  { %v62_v8 = vmul.f32 0.03125, %v59_v7  ;;  %v65_v9 = vmul.f32 %v63_v6, %v63_v6 }
  0x93   :  { %v64_v10 = vsub.f32 %v2574_v1, %v62_v8  ;;  %v67_v11 = vsel %vm53_vm0, %v65_v9, 0.0 }
  0x94   :  { %68 = vadd.xlane.f32.xlu1 %v67_v11 }
  0x95   :  { %v66_v12 = vmul.f32 %v64_v10, %v64_v10 }
  0x97   :  { %v70_v13 = vsel %vm53_vm0, %v66_v12, 0.0 }
  0x98   :  { %71 = vadd.xlane.f32.xlu1 %v70_v13 }
 0x11d   :  { %v69_v18 = vpop.xlane.xlu1 %68 }
 0x11e   :  { %v73_v19 = vmul.f32 0.03125, %v69_v18 }
 0x120   :  { %v75_v20 = vadd.f32 1e-05, %v73_v19 }
 0x121   :  { %v72_v21 = vpop.xlane.xlu1 %71 }
 0x122   :  { %2409 = vrsqrt.f32 %v75_v20  ;;  %v74_v22 = vmul.f32 0.03125, %v72_v21 }
 0x124   :  { %v76_v23 = vadd.f32 1e-05, %v74_v22 }
 0x126   :  { %2411 = vrsqrt.f32 %v76_v23 }
 0x12f   :  { %v2410_v24 = vpop.eup %2409 }
 0x130   :  { %v79_v26 = vmul.f32 %v2410_v24, %v63_v6 }
 0x132   :  { %v87_v28 = vmul.f32 %v2118_v25, %v79_v26 }
 0x133   :  { %v2412_v29 = vpop.eup %2411 }
 0x134   :  { %v80_v30 = vmul.f32 %v2412_v29, %v64_v10  ;;  %v95_v31 = vadd.f32 %v2119_v27, %v87_v28 }
 0x136   :  { %v88_v32 = vmul.f32 %v2118_v25, %v80_v30  ;;  %2244 = vmatprep.mubr.msk.f32.mxu0 %vm53_vm0, %v95_v31 }
 0x138   :  { %v96_v33 = vadd.f32 %v2119_v27, %v88_v32 }
 0x13a   :  { %2245 = vmatmul.mubr.msk.f32.vlgmr.msra.gmra.mxu0 %vm53_vm0, %v96_v33 }
 0x13b   :  { %2249 = vmatprep.mubr.msk.f32.mxu0 %vm2476_vm1, %v2475_v34 }
 0x1fa   :  { %v2246_v36 = vpop.f32.mrf.mxu0 }
 0x1fb   :  { %v2613_v37 = vadd.f32 %v2246_v36, %v2120_v35 }
 0x1fc   :  { %v180_v38 = vpop.f32.mrf.mxu0 }
 0x1fd   :  { %v2615_v39 = vadd.f32 %v2120_v35, %v180_v38  ;;  %272 = vrot.lane.b32.xlu1 %v2613_v37, %s2477_s4  ;;  %v189_v35 = vld [vmem:[%s2876_s6] sm:$0xff] }
 0x1ff   :  { %194 = vrot.lane.b32.xlu0 %v2615_v39, %s2477_s4 }
 0x26f   :  { %v273_v41 = vpop.permute.xlu1 %272 }
 0x271   :  { %v195_v40 = vpop.permute.xlu0 %194 }
 0x272   :  { %2248 = vmatpush3.xpose.msk.msra.mxu0 %vm196_vm2, %v195_v40 }
 0x273   :  { %2252 = vmatprep.subr.mxu0 %v2475_v34 }
 0x275   :  { %2250 = vmatmul.mubr.msk.f32.vlgmr.msra.gmra.mxu0 %vm196_vm2, %v2615_v39 }
 0x276   :  { %2253 = vmatpush3.xpose.msk.msra.mxu0 %vm196_vm2, %v273_v41  ;;  %2254 = vmatprep.mubr.msk.f32.mxu0 %vm2476_vm1, %v2475_v34 }
 0x277   :  { %2257 = vmatprep.subr.mxu0 %v2475_v34 }
 0x279   :  { %2255 = vmatmul.mubr.msk.f32.vlgmr.msra.gmra.mxu0 %vm196_vm2, %v2613_v37 }
 0x27a   :  { %2259 = vmatprep.mubr.msk.f32.mxu0 %vm2476_vm1, %v2475_v34 }
 0x335   :  { %v267_v43 = vpop.f32.mrf.mxu0 }
 0x336   :  { %v268_v44 = vadd.f32 %v267_v43, %v2634_v42 }
 0x337   :  { %v2251_v45 = vpop.f32.mrf.mxu0 }
 0x338   :  { %v348_v46 = vsel %vm196_vm2, %v268_v44, -inf }
 0x339   :  { %349 = vmax.xlane.f32.xlu1 %v348_v46  ;;  %v344_v47 = vpop.f32.mrf.mxu0 }
 0x33a   :  { %v345_v48 = vadd.f32 %v344_v47, %v2634_v42 }
 0x33b   :  { %v2256_v49 = vpop.f32.mrf.mxu0 }
 0x33c   :  { %v351_v50 = vsel %vm196_vm2, %v345_v48, -inf  ;;  %v190_v49 = vld [vmem:[%s2876_s6 + $0x8] sm:$0xff] }
 0x33d   :  { %352 = vmax.xlane.f32.xlu0 %v351_v50 }
 0x34a   :  { %446 = vrot.lane.b32.xlu1 %v2613_v37, %s2478_s29 }
 0x34e   :  { %524 = vrot.lane.b32.xlu1 %v2615_v39, %s2479_s30 }
 0x352   :  { %602 = vrot.lane.b32.xlu1 %v2613_v37, %s2479_s30 }
 0x3c2   :  { %v350_v51 = vpop.xlane.xlu1 %349 }
 0x3c3   :  { %v354_v52 = vsub.f32 %v268_v44, %v350_v51 }
 0x3c5   :  { %v356_v53 = vmul.f32 1.442695, %v354_v52 }
 0x3c6   :  { %v447_v54 = vpop.permute.xlu1 %446  ;;  %v353_v55 = vpop.xlane.xlu0 %352 }
 0x3c7   :  { %2413 = vpow2.f32 %v356_v53  ;;  %v355_v56 = vsub.f32 %v345_v48, %v353_v55 }
 0x3c9   :  { %v358_v57 = vmul.f32 1.442695, %v355_v56 }
 0x3ca   :  { %v525_v58 = vpop.permute.xlu1 %524 }
 0x3cb   :  { %2415 = vpow2.f32 %v358_v57 }
 0x3ce   :  { %v603_v59 = vpop.permute.xlu1 %602 }
 0x3cf   :  { %2273 = vmatpush3.xpose.msk.msra.mxu1 %vm196_vm2, %v603_v59 }
 0x3d0   :  { %2282 = vmatprep.subr.mxu1 %v2475_v34 }
 0x3d4   :  { %v2414_v60 = vpop.eup %2413 }
 0x3d5   :  { %v360_v61 = vsel %vm196_vm2, %v2414_v60, 0.0 }
 0x3d6   :  { %361 = vadd.xlane.f32.xlu0 %v360_v61 }
 0x3d8   :  { %v2416_v62 = vpop.eup %2415 }
 0x3d9   :  { %v363_v63 = vsel %vm196_vm2, %v2416_v62, 0.0 }
 0x3da   :  { %364 = vadd.xlane.f32.xlu1 %v363_v63 }
 0x3eb   :  { %600 = vrot.lane.b32.xlu1 %v2613_v37, %s2480_s1 }
 0x3ec   :  { %370 = vrot.lane.b32.xlu0 %v2615_v39, %s2478_s29 }
 0x3f0   :  { %522 = vrot.lane.b32.xlu0 %v2615_v39, %s2480_s1 }
 0x45f   :  { %v362_v2 = vpop.xlane.xlu0 %361 }
 0x460   :  { %2417 = vrcp.f32 %v362_v2 }
 0x463   :  { %v365_v3 = vpop.xlane.xlu1 %364  ;;  %v371_v4 = vpop.permute.xlu0 %370 }
 0x464   :  { %2419 = vrcp.f32 %v365_v3  ;;  %2258 = vmatpush3.msra.mxu0 %v371_v4 }
 0x465   :  { %2262 = vmatprep.subr.mxu0 %v2475_v34 }
 0x467   :  { %v601_v5 = vpop.permute.xlu1 %600  ;;  %v523_v10 = vpop.permute.xlu0 %522 }
 0x468   :  { %2275 = vmatmul.mubr.msk.f32.vlgmr.msra.gmra.mxu1 %vm196_vm2, %v601_v5 }
 0x469   :  { %2284 = vmatprep.mubr.msk.f32.mxu1 %vm2476_vm1, %v2475_v34 }
 0x46d   :  { %v2418_v6 = vpop.eup %2417 }
 0x46e   :  { %v367_v7 = vmul.f32 %v2418_v6, %v2414_v60 }
 0x470   :  { %2260 = vmatmul.mubr.msk.f32.vlgmr.msra.gmra.mxu0 %vm196_vm2, %v367_v7 }
 0x471   :  { %v2420_v8 = vpop.eup %2419  ;;  %2263 = vmatpush3.msra.mxu0 %v447_v54  ;;  %2264 = vmatprep.mubr.msk.f32.mxu0 %vm2476_vm1, %v2475_v34 }
 0x472   :  { %2267 = vmatprep.subr.mxu0 %v2475_v34  ;;  %v369_v9 = vmul.f32 %v2420_v8, %v2416_v62 }
 0x474   :  { %2265 = vmatmul.mubr.msk.f32.vlgmr.msra.gmra.mxu0 %vm196_vm2, %v369_v9 }
 0x475   :  { %2268 = vmatpush3.xpose.msk.msra.mxu0 %vm196_vm2, %v525_v58  ;;  %2269 = vmatprep.mubr.msk.f32.mxu0 %vm2476_vm1, %v2475_v34 }
 0x476   :  { %2277 = vmatprep.subr.mxu0 %v2475_v34 }
 0x478   :  { %2270 = vmatmul.mubr.msk.f32.vlgmr.msra.gmra.mxu0 %vm196_vm2, %v523_v10 }
 0x479   :  { %2279 = vmatprep.mubr.msk.f32.mxu0 %vm2476_vm1, %v2475_v34 }
 0x528   :  { %v674_v11 = vpop.f32.mrf.mxu1 }
 0x529   :  { %v675_v12 = vadd.f32 %v674_v11, %v2634_v42 }
 0x52a   :  { %v2276_v13 = vpop.f32.mrf.mxu1 }
 0x52b   :  { %v681_v14 = vsel %vm196_vm2, %v675_v12, -inf }
 0x52c   :  { %682 = vmax.xlane.f32.xlu1 %v681_v14 }
 0x530   :  { %v442_v15 = vpop.f32.mrf.mxu0 }
 0x532   :  { %v2261_v16 = vpop.f32.mrf.mxu0 }
 0x534   :  { %v518_v17 = vpop.f32.mrf.mxu0 }
 0x536   :  { %v2266_v18 = vpop.f32.mrf.mxu0 }
 0x538   :  { %v596_v19 = vpop.f32.mrf.mxu0 }
 0x539   :  { %v597_v20 = vadd.f32 %v596_v19, %v2634_v42 }
 0x53a   :  { %v2271_v21 = vpop.f32.mrf.mxu0 }
 0x53b   :  { %v678_v22 = vsel %vm196_vm2, %v597_v20, -inf }
 0x53c   :  { %679 = vmax.xlane.f32.xlu0 %v678_v22 }
 0x53d   :  { %776 = vrot.lane.b32.xlu1 %v2613_v37, %s2481_s15 }
 0x541   :  { %1016 = vrot.lane.b32.xlu1 %v2615_v39, %s2482_s16 }
 0x545   :  { %1094 = vrot.lane.b32.xlu1 %v2613_v37, %s2482_s16 }
 0x549   :  { %1092 = vrot.lane.b32.xlu1 %v2613_v37, %s2483_s0 }
 0x5b5   :  { %v683_v23 = vpop.xlane.xlu1 %682 }
 0x5b6   :  { %v685_v24 = vsub.f32 %v675_v12, %v683_v23 }
 0x5b8   :  { %v688_v25 = vmul.f32 1.442695, %v685_v24 }
 0x5b9   :  { %v777_v26 = vpop.permute.xlu1 %776 }
 0x5ba   :  { %2421 = vpow2.f32 %v688_v25  ;;  %2283 = vmatpush3.msra.mxu1 %v777_v26 }
 0x5bb   :  { %2292 = vmatprep.subr.mxu1 %v189_v35 }
 0x5bd   :  { %v1017_v38 = vpop.permute.xlu1 %1016 }
 0x5c1   :  { %v1095_v44 = vpop.permute.xlu1 %1094 }
 0x5c5   :  { %v680_v27 = vpop.xlane.xlu0 %679  ;;  %v1093_v46 = vpop.permute.xlu1 %1092 }
 0x5c6   :  { %v684_v28 = vsub.f32 %v597_v20, %v680_v27  ;;  %v191_v27 = vld [vmem:[%s2876_s6 + $0x10] sm:$0xff] }
 0x5c7   :  { %v2422_v29 = vpop.eup %2421 }
 0x5c8   :  { %v686_v30 = vmul.f32 1.442695, %v684_v28  ;;  %v693_v31 = vsel %vm196_vm2, %v2422_v29, 0.0 }
 0x5c9   :  { %694 = vadd.xlane.f32.xlu0 %v693_v31 }
 0x5ca   :  { %2423 = vpow2.f32 %v686_v30 }
 0x5d7   :  { %v2424_v32 = vpop.eup %2423 }
 0x5d8   :  { %v690_v33 = vsel %vm196_vm2, %v2424_v32, 0.0 }
 0x5d9   :  { %691 = vadd.xlane.f32.xlu0 %v690_v33 }
 0x5ef   :  { %700 = vrot.lane.b32.xlu0 %v2615_v39, %s2481_s15 }
 0x5f3   :  { %1014 = vrot.lane.b32.xlu0 %v2615_v39, %s2483_s0 }
 0x652   :  { %v695_v36 = vpop.xlane.xlu0 %694 }
 0x653   :  { %2425 = vrcp.f32 %v695_v36 }
 0x660   :  { %v2426_v40 = vpop.eup %2425 }
 0x661   :  { %v699_v41 = vmul.f32 %v2426_v40, %v2422_v29 }
 0x662   :  { %v692_v43 = vpop.xlane.xlu0 %691 }
 0x663   :  { %2427 = vrcp.f32 %v692_v43  ;;  %2285 = vmatmul.mubr.msk.f32.vlgmr.msra.gmra.mxu1 %vm196_vm2, %v699_v41 }
 0x664   :  { %2294 = vmatprep.mubr.msk.f32.mxu1 %vm196_vm2, %v442_v15  ;;  %2293 = vmatpush3.msra.mxu1 %v189_v35 }
 0x665   :  { %2302 = vmatprep.subr.mxu1 %v2475_v34 }
 0x666   :  { %v701_v45 = vpop.permute.xlu0 %700 }
 0x667   :  { %2278 = vmatpush3.msra.mxu0 %v701_v45  ;;  %2295 = vmatmul.mubr.msk.f32.vlgmr.msra.gmra.mxu1 %vm196_vm2, %v518_v17 }
 0x668   :  { %2303 = vmatpush3.xpose.msk.msra.mxu1 %vm196_vm2, %v1095_v44  ;;  %2304 = vmatprep.mubr.msk.f32.mxu1 %vm2476_vm1, %v2475_v34 }
 0x669   :  { %2312 = vmatprep.subr.mxu1 %v2475_v34  ;;  %2287 = vmatprep.subr.mxu0 %v190_v49 }
 0x66a   :  { %v1015_v60 = vpop.permute.xlu0 %1014 }
 0x66b   :  { %2305 = vmatmul.mubr.msk.f32.vlgmr.msra.gmra.mxu1 %vm196_vm2, %v1093_v46 }
 0x66c   :  { %2314 = vmatprep.mubr.msk.f32.mxu1 %vm2476_vm1, %v2475_v34 }
 0x670   :  { %v2428_v47 = vpop.eup %2427 }
 0x671   :  { %v697_v48 = vmul.f32 %v2428_v47, %v2424_v32 }
 0x673   :  { %2280 = vmatmul.mubr.msk.f32.vlgmr.msra.gmra.mxu0 %vm196_vm2, %v697_v48 }
 0x674   :  { %2288 = vmatpush3.msra.mxu0 %v190_v49 }
 0x675   :  { %2297 = vmatprep.subr.mxu0 %v2475_v34 }
 0x723   :  { %v848_v50 = vpop.f32.mrf.mxu1 }
 0x725   :  { %v2286_v51 = vpop.f32.mrf.mxu1 }
 0x727   :  { %v2697_v52 = vpop.f32.mrf.mxu1 }
 0x729   :  { %v2699_v53 = vpop.f32.mrf.mxu1 }
 0x72b   :  { %v1166_v54 = vpop.f32.mrf.mxu1 }
 0x72c   :  { %v1167_v55 = vadd.f32 %v1166_v54, %v2634_v42 }
 0x72d   :  { %v2306_v56 = vpop.f32.mrf.mxu1 }
 0x72e   :  { %v1173_v57 = vsel %vm196_vm2, %v1167_v55, -inf }
 0x72f   :  { %1174 = vmax.xlane.f32.xlu1 %v1173_v57 }
 0x733   :  { %v772_v58 = vpop.f32.mrf.mxu0 }
 0x734   :  { %2289 = vmatprep.mubr.msk.f32.mxu0 %vm196_vm2, %v772_v58 }
 0x735   :  { %v2281_v59 = vpop.f32.mrf.mxu0  ;;  %2290 = vmatmul.mubr.msk.f32.vlgmr.msra.gmra.mxu0 %vm196_vm2, %v848_v50 }
 0x736   :  { %2298 = vmatpush3.xpose.msk.msra.mxu0 %vm196_vm2, %v1017_v38  ;;  %2299 = vmatprep.mubr.msk.f32.mxu0 %vm2476_vm1, %v2475_v34 }
 0x737   :  { %2307 = vmatprep.subr.mxu0 %v2475_v34 }
 0x739   :  { %2300 = vmatmul.mubr.msk.f32.vlgmr.msra.gmra.mxu0 %vm196_vm2, %v1015_v60 }
 0x73a   :  { %2309 = vmatprep.mubr.msk.f32.mxu0 %vm2476_vm1, %v2475_v34 }
 0x740   :  { %1268 = vrot.lane.b32.xlu1 %v2613_v37, %s2484_s21 }
 0x744   :  { %1429 = vrot.lane.b32.xlu1 %v2615_v39, %s2485_s22 }
 0x748   :  { %1507 = vrot.lane.b32.xlu1 %v2613_v37, %s2485_s22 }
 0x74c   :  { %1505 = vrot.lane.b32.xlu1 %v2613_v37, %s2486_s23 }
 0x7b8   :  { %v1175_v61 = vpop.xlane.xlu1 %1174 }
 0x7b9   :  { %v1177_v63 = vsub.f32 %v1167_v55, %v1175_v61 }
 0x7bb   :  { %v1180_v2 = vmul.f32 1.442695, %v1177_v63 }
 0x7bc   :  { %v1269_v62 = vpop.permute.xlu1 %1268 }
 0x7bd   :  { %2313 = vmatpush3.msra.mxu1 %v1269_v62  ;;  %2429 = vpow2.f32 %v1180_v2 }
 0x7be   :  { %2322 = vmatprep.subr.mxu1 %v2475_v34 }
 0x7c0   :  { %v1430_v19 = vpop.permute.xlu1 %1429 }
 0x7c4   :  { %v1508_v32 = vpop.permute.xlu1 %1507 }
 0x7c8   :  { %v1506_v36 = vpop.permute.xlu1 %1505 }
 0x7ca   :  { %v2430_v9 = vpop.eup %2429 }
 0x7cb   :  { %v1185_v10 = vsel %vm196_vm2, %v2430_v9, 0.0 }
 0x7f5   :  { %v2719_v3 = vpop.f32.mrf.mxu0 }
 0x7f6   :  { %v1011_v45 = vadd.f32 %v2697_v52, %v2719_v3  ;;  %v192_v3 = vld [vmem:[%s2876_s6 + $0x18] sm:$0xff] }
 0x7f7   :  { %v2721_v4 = vpop.f32.mrf.mxu0 }
 0x7f8   :  { %v1006_v47 = vadd.f32 %v2699_v53, %v2721_v4 }
 0x7f9   :  { %v1088_v5 = vpop.f32.mrf.mxu0 }
 0x7fa   :  { %v1089_v6 = vadd.f32 %v1088_v5, %v2634_v42 }
 0x7fb   :  { %v2301_v7 = vpop.f32.mrf.mxu0 }
 0x7fc   :  { %v1170_v8 = vsel %vm196_vm2, %v1089_v6, -inf }
 0x7fd   :  { %1171 = vmax.xlane.f32.xlu0 %v1170_v8 }
 0x801   :  { %1186 = vadd.xlane.f32.xlu0 %v1185_v10 }
 0x886   :  { %v1172_v11 = vpop.xlane.xlu0 %1171 }
 0x887   :  { %v1176_v12 = vsub.f32 %v1089_v6, %v1172_v11 }
 0x889   :  { %v1178_v13 = vmul.f32 1.442695, %v1176_v12 }
 0x88a   :  { %v1187_v14 = vpop.xlane.xlu0 %1186 }
 0x88b   :  { %2431 = vpow2.f32 %v1178_v13 }
 0x88c   :  { %2433 = vrcp.f32 %v1187_v14 }
 0x898   :  { %v2432_v15 = vpop.eup %2431 }
 0x899   :  { %v2434_v16 = vpop.eup %2433  ;;  %v1182_v17 = vsel %vm196_vm2, %v2432_v15, 0.0 }
 0x89a   :  { %1183 = vadd.xlane.f32.xlu0 %v1182_v17  ;;  %v1191_v18 = vmul.f32 %v2434_v16, %v2430_v9  ;;  %v2155_v9 = vld [vmem:[%s2877_s7] ss:$0 sm:$0xff] }
 0x89c   :  { %2315 = vmatmul.mubr.msk.f32.vlgmr.msra.gmra.mxu1 %vm196_vm2, %v1191_v18 }
 0x89d   :  { %2323 = vmatpush3.xpose.msk.msra.mxu1 %vm196_vm2, %v1430_v19  ;;  %2324 = vmatprep.mubr.msk.f32.mxu1 %vm2476_vm1, %v2475_v34 }
 0x89e   :  { %2332 = vmatprep.subr.mxu1 %v2475_v34 }
 0x8b0   :  { %1192 = vrot.lane.b32.xlu0 %v2615_v39, %s2484_s21 }
 0x8b4   :  { %1427 = vrot.lane.b32.xlu0 %v2615_v39, %s2486_s23 }
 0x923   :  { %v1184_v20 = vpop.xlane.xlu0 %1183 }
 0x924   :  { %2435 = vrcp.f32 %v1184_v20 }
 0x927   :  { %v1193_v21 = vpop.permute.xlu0 %1192 }
 0x928   :  { %2308 = vmatpush3.msra.mxu0 %v1193_v21 }
 0x929   :  { %2317 = vmatprep.subr.mxu0 %v191_v27 }
 0x92b   :  { %v1428_v22 = vpop.permute.xlu0 %1427 }
 0x92c   :  { %2325 = vmatmul.mubr.msk.f32.vlgmr.msra.gmra.mxu1 %vm196_vm2, %v1428_v22 }
 0x92d   :  { %2334 = vmatprep.mubr.msk.f32.mxu1 %vm2476_vm1, %v2475_v34 }
 0x931   :  { %v2436_v23 = vpop.eup %2435 }
 0x932   :  { %v1189_v24 = vmul.f32 %v2436_v23, %v2432_v15 }
 0x934   :  { %2310 = vmatmul.mubr.msk.f32.vlgmr.msra.gmra.mxu0 %vm196_vm2, %v1189_v24 }
 0x935   :  { %2318 = vmatpush3.msra.mxu0 %v191_v27  ;;  %v1897_v27 = vld [vmem:[%s2880_s10 + $0x10] sm:$0xff] }
 0x936   :  { %2327 = vmatprep.subr.mxu0 %v2475_v34 }
 0x95c   :  { %v1340_v25 = vpop.f32.mrf.mxu1 }
 0x95e   :  { %v2316_v26 = vpop.f32.mrf.mxu1 }
 0x95f   :  { %v1898_v26 = vld [vmem:[%s2880_s10 + $0x18] sm:$0xff] }
 0x9ec   :  { %v1501_v28 = vpop.f32.mrf.mxu1 }
 0x9ed   :  { %v1502_v29 = vadd.f32 %v1501_v28, %v2634_v42  ;;  %v1896_v28 = vld [vmem:[%s2880_s10 + $0x8] sm:$0xff] }
 0x9ee   :  { %v2326_v30 = vpop.f32.mrf.mxu1 }
 0x9ef   :  { %v1583_v31 = vsel %vm196_vm2, %v1502_v29, -inf  ;;  %v2013_v30 = vld [vmem:[%s2882_s12 + $0x78] sm:$0xff] }
 0x9f0   :  { %1584 = vmax.xlane.f32.xlu0 %v1583_v31  ;;  %v2012_v31 = vld [vmem:[%s2882_s12 + $0x70] sm:$0xff] }
 0x9f4   :  { %v1264_v33 = vpop.f32.mrf.mxu0 }
 0x9f5   :  { %2319 = vmatprep.mubr.msk.f32.mxu0 %vm196_vm2, %v1264_v33 }
 0x9f6   :  { %v2311_v35 = vpop.f32.mrf.mxu0  ;;  %2320 = vmatmul.mubr.msk.f32.vlgmr.msra.gmra.mxu0 %vm196_vm2, %v1340_v25 }
 0x9f7   :  { %2328 = vmatpush3.xpose.msk.msra.mxu0 %vm196_vm2, %v1508_v32  ;;  %2329 = vmatprep.mubr.msk.f32.mxu0 %vm2476_vm1, %v2475_v34  ;;  %v2011_v32 = vld [vmem:[%s2882_s12 + $0x68] sm:$0xff] }
 0x9f8   :  { %2337 = vmatprep.subr.mxu0 %v2475_v34 }
 0x9fa   :  { %2330 = vmatmul.mubr.msk.f32.vlgmr.msra.gmra.mxu0 %vm196_vm2, %v1506_v36 }
 0x9fb   :  { %2339 = vmatprep.mubr.msk.f32.mxu0 %vm2476_vm1, %v2475_v34 }
 0xa79   :  { %v1585_v38 = vpop.xlane.xlu0 %1584 }
 0xa7a   :  { %v1589_v40 = vsub.f32 %v1502_v29, %v1585_v38  ;;  %v1895_v29 = vld [vmem:[%s2880_s10] sm:$0xff] }
 0xa7c   :  { %v1591_v41 = vmul.f32 1.442695, %v1589_v40 }
 0xa7e   :  { %2437 = vpow2.f32 %v1591_v41 }
 0xa8b   :  { %v2438_v43 = vpop.eup %2437 }
 0xa8c   :  { %v1595_v44 = vsel %vm196_vm2, %v2438_v43, 0.0 }
 0xa8d   :  { %1596 = vadd.xlane.f32.xlu0 %v1595_v44  ;;  %v2156_v44 = vld [vmem:[%s2878_s8] ss:$0 sm:$0xff]  ;;  %s2107_s8 = sshll.u32 %s2488_s25, 4  ;;  %s2108_s8 = int_to_ptr.vmem [resolvable:$true] %s2107_s8 }
 0xa8e   :  { %p2458_p1 = scmp.lt.s32.totalorder %s2108_s8, %s2108_s8 }
 0xab6   :  { %v2321_v46 = vpop.f32.mrf.mxu0 }
 0xab7   :  { %v1426_v48 = vadd.f32 %v2321_v46, %v1011_v45 }
 0xab8   :  { %v1416_v49 = vpop.f32.mrf.mxu0 }
 0xab9   :  { %v1425_v50 = vadd.f32 %v1416_v49, %v1006_v47  ;;  %v2157_v49 = vld [vmem:[%s2879_s9] ss:$0 sm:$0xff] }
 0xaba   :  { %v1579_v51 = vpop.f32.mrf.mxu0 }
 0xabb   :  { %v1580_v34 = vadd.f32 %v1579_v51, %v2634_v42 }
 0xabc   :  { %v2331_v54 = vpop.f32.mrf.mxu0 }
 0xabd   :  { %v1586_v55 = vsel %vm196_vm2, %v1580_v34, -inf  ;;  %v2010_v54 = vld [vmem:[%s2882_s12 + $0x60] sm:$0xff] }
 0xabe   :  { %1587 = vmax.xlane.f32.xlu1 %v1586_v55  ;;  %v2009_v55 = vld [vmem:[%s2882_s12 + $0x58] sm:$0xff] }
 0xacf   :  { %1681 = vrot.lane.b32.xlu1 %v2613_v37, %s2487_s26 }
 0xb16   :  { %v1597_v42 = vpop.xlane.xlu0 %1596 }
 0xb47   :  { %v1588_v56 = vpop.xlane.xlu1 %1587 }
 0xb48   :  { %v1590_v57 = vsub.f32 %v1580_v34, %v1588_v56  ;;  %v2008_v56 = vld [vmem:[%s2882_s12 + $0x50] sm:$0xff] }
 0xb4a   :  { %v1593_v52 = vmul.f32 1.442695, %v1590_v57  ;;  %v2007_v57 = vld [vmem:[%s2882_s12 + $0x48] sm:$0xff] }
 0xb4b   :  { %v1682_v58 = vpop.permute.xlu1 %1681 }
 0xb4c   :  { %2439 = vpow2.f32 %v1593_v52  ;;  %2338 = vmatpush3.msra.mxu0 %v1682_v58  ;;  %v2006_v52 = vld [vmem:[%s2882_s12 + $0x40] sm:$0xff]  ;;  %v2005_v58 = vld [vmem:[%s2882_s12 + $0x38] sm:$0xff] }
 0xb4d   :  { %2441 = vrcp.f32 %v1597_v42  ;;  %2347 = vmatprep.subr.mxu0 %v1898_v26  ;;  %v2002_v42 = vld [vmem:[%s2882_s12 + $0x20] sm:$0xff] }
 0xb59   :  { %v2440_v53 = vpop.eup %2439 }
 0xb5a   :  { %v1598_v59 = vsel %vm196_vm2, %v2440_v53, 0.0  ;;  %v2442_v61 = vpop.eup %2441 }
 0xb5b   :  { %1599 = vadd.xlane.f32.xlu0 %v1598_v59  ;;  %v1602_v63 = vmul.f32 %v2442_v61, %v2438_v43  ;;  %v2003_v59 = vld [vmem:[%s2882_s12 + $0x28] sm:$0xff]  ;;  %v2000_v61 = vld [vmem:[%s2882_s12 + $0x10] sm:$0xff] }
 0xb71   :  { %1605 = vrot.lane.b32.xlu0 %v2615_v39, %s2487_s26  ;;  %s2453_s26 = scalar_lea.vmem %s2108_s8, 256 }
 0xb72   :  { %p2454_p0 = scmp.ne.s32.totalorder %s2108_s8, %s2453_s26  ;;  %p2459_p2 = scmp.lt.s32.totalorder %s2453_s26, %s2453_s26 }
 0xb74   :  { %p2460_p3 = por %p2459_p2, %p2458_p1 }
 0xb76   :  { %p2461_p4 = pnand %p2460_p3, %p2454_p0 }
 0xbe4   :  { %v1600_v60 = vpop.xlane.xlu0 %1599 }
 0xbe5   :  { %2443 = vrcp.f32 %v1600_v60  ;;  %v2001_v60 = vld [vmem:[%s2882_s12 + $0x18] sm:$0xff] }
 0xbe8   :  { %v1606_v62 = vpop.permute.xlu0 %1605 }
 0xbe9   :  { %2333 = vmatpush3.msra.mxu1 %v1606_v62  ;;  %v1999_v62 = vld [vmem:[%s2882_s12 + $0x8] sm:$0xff] }
 0xbea   :  { %2335 = vmatmul.mubr.msk.f32.vlgmr.msra.gmra.mxu1 %vm196_vm2, %v1602_v63  ;;  %2342 = vmatprep.subr.mxu1 %v192_v3  ;;  %v1998_v63 = vld [vmem:[%s2882_s12] sm:$0xff] }
 0xbeb   :  { %2343 = vmatpush3.msra.mxu1 %v192_v3 }
 0xbec   :  { %2358 = vmatprep.subr.mxu1 %v2013_v30 }
 0xbf2   :  { %v2444_v37 = vpop.eup %2443 }
 0xbf3   :  { %v1604_v2 = vmul.f32 %v2444_v37, %v2440_v53  ;;  %v2004_v53 = vld [vmem:[%s2882_s12 + $0x30] sm:$0xff]  ;;  %v2158_v37 = vld [vmem:[%s2881_s11] ss:$0 sm:$0xff] }
 0xbf5   :  { %2340 = vmatmul.mubr.msk.f32.vlgmr.msra.gmra.mxu0 %vm196_vm2, %v1604_v2 }
 0xbf6   :  { %2348 = vmatpush3.msra.mxu0 %v1898_v26 }
 0xbf7   :  { %2349 = vmatprep.subr.mxu0 %v1897_v27 }
 0xbf8   :  { %2350 = vmatpush3.msra.mxu0 %v1897_v27 }
 0xbf9   :  { %2351 = vmatprep.subr.mxu0 %v1896_v28 }
 0xbfa   :  { %2352 = vmatpush3.msra.mxu0 %v1896_v28 }
 0xbfb   :  { %2353 = vmatprep.subr.mxu0 %v1895_v29 }
 0xbfc   :  { %2354 = vmatpush3.msra.mxu0 %v1895_v29 }
 0xcaa   :  { %v1677_v39 = vpop.f32.mrf.mxu1 }
 0xcab   :  { %2344 = vmatprep.mubr.msk.f32.mxu1 %vm196_vm2, %v1677_v39 }
 0xcac   :  { %v2336_v4 = vpop.f32.mrf.mxu1 }
 0xcb5   :  { %v1753_v5 = vpop.f32.mrf.mxu0 }
 0xcb6   :  { %2345 = vmatmul.mubr.msk.f32.vlgmr.msra.gmra.mxu1 %vm196_vm2, %v1753_v5 }
 0xcb7   :  { %v2341_v6 = vpop.f32.mrf.mxu0  ;;  %2359 = vmatpush3.msra.mxu1 %v2013_v30 }
 0xcb8   :  { %2360 = vmatprep.subr.mxu1 %v2012_v31 }
 0xcb9   :  { %2361 = vmatpush3.msra.mxu1 %v2012_v31 }
 0xcba   :  { %2362 = vmatprep.subr.mxu1 %v2011_v32 }
 0xcbb   :  { %2363 = vmatpush3.msra.mxu1 %v2011_v32 }
 0xcbc   :  { %2364 = vmatprep.subr.mxu1 %v2010_v54 }
 0xcbd   :  { %2365 = vmatpush3.msra.mxu1 %v2010_v54 }
 0xcbe   :  { %2366 = vmatprep.subr.mxu1 %v2009_v55 }
 0xcbf   :  { %2367 = vmatpush3.msra.mxu1 %v2009_v55 }
 0xcc0   :  { %2368 = vmatprep.subr.mxu1 %v2008_v56 }
 0xcc1   :  { %2369 = vmatpush3.msra.mxu1 %v2008_v56 }
 0xcc2   :  { %2370 = vmatprep.subr.mxu1 %v2007_v57 }
 0xcc3   :  { %2371 = vmatpush3.msra.mxu1 %v2007_v57 }
 0xcc4   :  { %2372 = vmatprep.subr.mxu1 %v2006_v52 }
 0xcc5   :  { %2373 = vmatpush3.msra.mxu1 %v2006_v52 }
 0xcc6   :  { %2374 = vmatprep.subr.mxu1 %v2005_v58 }
 0xcc7   :  { %2375 = vmatpush3.msra.mxu1 %v2005_v58 }
 0xcc8   :  { %2376 = vmatprep.subr.mxu1 %v2004_v53 }
 0xcc9   :  { %2377 = vmatpush3.msra.mxu1 %v2004_v53 }
 0xcca   :  { %2378 = vmatprep.subr.mxu1 %v2003_v59 }
 0xccb   :  { %2379 = vmatpush3.msra.mxu1 %v2003_v59 }
 0xccc   :  { %2380 = vmatprep.subr.mxu1 %v2002_v42 }
 0xccd   :  { %2381 = vmatpush3.msra.mxu1 %v2002_v42 }
 0xcce   :  { %2382 = vmatprep.subr.mxu1 %v2001_v60 }
 0xccf   :  { %2383 = vmatpush3.msra.mxu1 %v2001_v60 }
 0xcd0   :  { %2384 = vmatprep.subr.mxu1 %v2000_v61 }
 0xcd1   :  { %2385 = vmatpush3.msra.mxu1 %v2000_v61 }
 0xcd2   :  { %2386 = vmatprep.subr.mxu1 %v1999_v62 }
 0xcd3   :  { %2387 = vmatpush3.msra.mxu1 %v1999_v62 }
 0xcd4   :  { %2388 = vmatprep.subr.mxu1 %v1998_v63 }
 0xcd5   :  { %2389 = vmatpush3.msra.mxu1 %v1998_v63 }
 0xd76   :  { %v2346_v7 = vpop.f32.mrf.mxu1 }
 0xd77   :  { %v1839_v8 = vadd.f32 %v2346_v7, %v1426_v48 }
 0xd78   :  { %v1829_v10 = vpop.f32.mrf.mxu1 }
 0xd79   :  { %v1841_v11 = vadd.f32 %v1839_v8, %v2574_v1  ;;  %v1838_v12 = vadd.f32 %v1829_v10, %v1425_v50 }
 0xd7b   :  { %v2776_v13 = vadd.f32 %v2155_v9, %v1841_v11  ;;  %v1840_v14 = vadd.f32 %v1838_v12, %v2569_v0 }
 0xd7d   :  { %v2779_v15 = vadd.f32 %v2155_v9, %v1840_v14  ;;  %v1856_v16 = vsel %vm53_vm0, %v2776_v13, 0.0 }
 0xd7e   :  { %1857 = vadd.xlane.f32.xlu0 %v1856_v16 }
 0xd7f   :  { %v1853_v17 = vsel %vm53_vm0, %v2779_v15, 0.0 }
 0xd80   :  { %1854 = vadd.xlane.f32.xlu1 %v1853_v17 }
 0xe07   :  { %v1858_v18 = vpop.xlane.xlu0 %1857 }
 0xe08   :  { %v1860_v19 = vmul.f32 0.03125, %v1858_v18  ;;  %v2161_v18 = vld [vmem:[%s2883_s13] ss:$0 sm:$0xff] }
 0xe09   :  { %v1855_v20 = vpop.xlane.xlu1 %1854 }
 0xe0a   :  { %v1862_v1 = vsub.f32 %v2776_v13, %v1860_v19  ;;  %v1859_v21 = vmul.f32 0.03125, %v1855_v20 }
 0xe0c   :  { %v1861_v22 = vsub.f32 %v2779_v15, %v1859_v21  ;;  %v1864_v23 = vmul.f32 %v1862_v1, %v1862_v1 }
 0xe0e   :  { %v1868_v0 = vsel %vm53_vm0, %v1864_v23, 0.0  ;;  %v1863_v24 = vmul.f32 %v1861_v22, %v1861_v22 }
 0xe0f   :  { %1869 = vadd.xlane.f32.xlu1 %v1868_v0 }
 0xe10   :  { %v1865_v25 = vsel %vm53_vm0, %v1863_v24, 0.0 }
 0xe11   :  { %1866 = vadd.xlane.f32.xlu0 %v1865_v25 }
 0xe98   :  { %v1870_v33 = vpop.xlane.xlu1 %1869 }
 0xe99   :  { %v1872_v35 = vmul.f32 0.03125, %v1870_v33 }
 0xe9a   :  { %v1867_v36 = vpop.xlane.xlu0 %1866 }
 0xe9b   :  { %v1874_v38 = vadd.f32 1e-05, %v1872_v35  ;;  %v1871_v40 = vmul.f32 0.03125, %v1867_v36 }
 0xe9d   :  { %2445 = vrsqrt.f32 %v1874_v38  ;;  %v1873_v41 = vadd.f32 1e-05, %v1871_v40 }
 0xe9f   :  { %2447 = vrsqrt.f32 %v1873_v41 }
 0xeaa   :  { %v2446_v43 = vpop.eup %2445 }
 0xeab   :  { %v1878_v45 = vmul.f32 %v2446_v43, %v1862_v1 }
 0xeac   :  { %v2448_v46 = vpop.eup %2447 }
 0xead   :  { %v1877_v47 = vmul.f32 %v2448_v46, %v1861_v22  ;;  %v1886_v48 = vmul.f32 %v2156_v44, %v1878_v45 }
 0xeaf   :  { %v1885_v50 = vmul.f32 %v2156_v44, %v1877_v47  ;;  %v1894_v34 = vadd.f32 %v2157_v49, %v1886_v48 }
 0xeb1   :  { %v1893_v51 = vadd.f32 %v2157_v49, %v1885_v50 }
 0xeb3   :  { %2355 = vmatprep.mubr.msk.f32.mxu0 %vm53_vm0, %v1893_v51 }
 0xeb4   :  { %2356 = vmatmul.mubr.msk.f32.vlgmr.msra.gmra.mxu0 %vm53_vm0, %v1894_v34 }
 0xf74   :  { %v2357_v2 = vpop.f32.mrf.mxu0 }
 0xf75   :  { %v1984_v3 = vadd.f32 %v2357_v2, %v2158_v37 }
 0xf76   :  { %v1978_v39 = vpop.f32.mrf.mxu0 }
 0xf77   :  { %v1991_v4 = vmul.f32 0.70710677, %v1984_v3  ;;  %v1979_v5 = vadd.f32 %v2158_v37, %v1978_v39  ;;  %v1988_v12 = vmul.f32 0.5, %v1984_v3 }
 0xf79   :  { %2449 = verf.f32 %v1991_v4  ;;  %v1990_v6 = vmul.f32 0.70710677, %v1979_v5  ;;  %v1987_v10 = vmul.f32 0.5, %v1979_v5 }
 0xf7b   :  { %2451 = verf.f32 %v1990_v6 }
 0xf86   :  { %v2450_v7 = vpop.eup %2449 }
 0xf87   :  { %v1995_v9 = vadd.f32 1.0, %v2450_v7 }
 0xf88   :  { %v2452_v8 = vpop.eup %2451 }
 0xf89   :  { %v1994_v11 = vadd.f32 1.0, %v2452_v8  ;;  %v1997_v16 = vmul.f32 %v1995_v9, %v1988_v12 }
 0xf8b   :  { %v1996_v14 = vmul.f32 %v1994_v11, %v1987_v10 }
 0xf8d   :  { %2390 = vmatprep.mubr.f32.mxu1 %v1996_v14 }
 0xf8e   :  { %2391 = vmatmul.mubr.f32.vlgmr.msra.gmra.mxu1 %v1997_v16 }
0x104e   :  { %v2392_v17 = vpop.f32.mrf.mxu1 }
0x104f   :  { %v2090_v19 = vadd.f32 %v2392_v17, %v2776_v13 }
0x1050   :  { %v2080_v20 = vpop.f32.mrf.mxu1 }
0x1051   :  { %v2099_v1 = vadd.f32 %v2161_v18, %v2090_v19  ;;  %v2089_v21 = vadd.f32 %v2080_v20, %v2779_v15 }
0x1053   :  { %2101 = vst.msk [vmem:[#allocation2 + $0x8] sm:$0xff] %vm53_vm0, %v2099_v1  ;;  %v2098_v22 = vadd.f32 %v2161_v18, %v2089_v21 }
0x1055   :  { %2100 = vst.msk [vmem:[#allocation2] sm:$0xff] %vm53_vm0, %v2098_v22 }
0x1056   :  { %2464 = shalt.err (!%p2461_p4)
}
0x1057   :  { %s2489_s13 = smov 128   ;;  %s2490_s9 = smov 8  }
0x1058   :  { %2113 = dma.vmem_to_hbm [thread:$0]  %s2108_s8, 256, %s2884_s14, [#allocation3], %s2489_s13, %s2489_s13, %s2490_s9  }
0x1059   :  { %2473 = dma.done.wait [#allocation3], 256  }
0x105a   :  { %2474 = vsyncadd [#allocation3], 4294967040 }
0x105b   :  { %2117 = vsyncpa [#allocation3], 1 }

</bundles_post_ra>
